<compile_context>
chip_gen: v5e
topology: v5e:2x2
jax: 0.10.0
libtpu: 0.0.40
codegen_flags: <defaults>
</compile_context>

<pallas_src>
import functools

import jax
import jax.numpy as jnp
from jax.experimental import pallas as pl
from jax.experimental.pallas import tpu as pltpu


def _ls_ce_kernel(x_ref, tgt_ref, loss_ref, *, smoothing):
    C = x_ref.shape[-1]
    confidence = 1.0 - smoothing
    uniform_w = smoothing / C

    x = x_ref[...].astype(jnp.float32)            # (TN, C) f32 for stable softmax math
    tgt = tgt_ref[...]                            # (TN, 1) int32

    # Per-row max over the class (lane) axis.
    m = jnp.max(x, axis=-1, keepdims=True)                                    # (TN, 1)

    # Softmax normalizer: sum_c exp(x - m), reduced on the (otherwise idle) MXU.
    ones_c = jnp.ones((C, 1), dtype=jnp.float32)
    e = jnp.exp(x - m)
    sum_e = jnp.dot(e, ones_c, preferred_element_type=jnp.float32)            # (TN, 1)
    lse = jnp.log(sum_e)                                                      # (TN, 1)

    # Fused weighted reduction:
    #   loss = (m + lse) - sum_c x[c] * (smoothing/C + confidence * 1{c == tgt})
    # which equals confidence * nll + smoothing * smooth_loss exactly.
    col = jax.lax.broadcasted_iota(jnp.int32, x.shape, 1)
    w = jnp.where(col == tgt, confidence + uniform_w, uniform_w)
    wsum = jnp.dot(x * w, ones_c, preferred_element_type=jnp.float32)         # (TN, 1)

    loss_ref[...] = (m + lse) - wsum


def _row_align(itemsize):
    # Native sublane packing: 8 rows for 4-byte, 16 for 2-byte, 32 for 1-byte dtypes.
    return max(8, 32 // max(1, itemsize))


def _pick_block_n(n_rows, n_cols, itemsize,
                  working_budget_bytes=36 * 1024 * 1024,
                  min_grid_steps=4):
    """Largest aligned row count whose in-kernel working set fits the VMEM budget.

    Working set per grid step (accounted against `working_budget_bytes`):
      - input tile, double buffered:         2 * block_n * C * itemsize
      - ~4 live f32 (block_n, C) temporaries: 16 * block_n * C
        (f32 upcast, exp, iota/mask, weighted product)
    """
    align = _row_align(itemsize)
    bytes_per_row = max(1, n_cols * (2 * itemsize + 16))
    rows = working_budget_bytes // bytes_per_row
    rows = max(align, (rows // align) * align)

    # Keep >= min_grid_steps grid steps when the batch is big enough, so the
    # 1-D "parallel" grid can shard across both TensorCores on v7x.
    if n_rows >= min_grid_steps * align:
        cap = pl.cdiv(n_rows, min_grid_steps)
        cap = ((cap + align - 1) // align) * align
        rows = min(rows, cap)

    # No point tiling beyond the (aligned) batch.
    n_aligned = ((n_rows + align - 1) // align) * align
    rows = min(rows, n_aligned)
    return max(rows, align)


def label_smoothing_cross_entropy(x, target, smoothing=0.1, *, block_n=None):
    """x: (N, C) float logits (f32 or bf16), target: (N,) int class indices.

    Returns the f32 scalar sum of per-row label-smoothed cross-entropy losses
    (same reduction as the PyTorch module's `loss.sum()`).
    """
    N, C = x.shape
    itemsize = jnp.dtype(x.dtype).itemsize
    align = _row_align(itemsize)

    if block_n is None:
        block_n = _pick_block_n(N, C, itemsize)
    block_n = max(align, (int(block_n) // align) * align)

    # No padding of the logits: the ragged final row-block is handled by Pallas
    # (OOB output writes are masked; per-row math never mixes rows, so stale
    # values read for OOB rows cannot contaminate valid rows).
    tgt2d = target.astype(jnp.int32).reshape(N, 1)

    grid = (pl.cdiv(N, block_n),)
    per_row = pl.pallas_call(
        functools.partial(_ls_ce_kernel, smoothing=float(smoothing)),
        out_shape=jax.ShapeDtypeStruct((N, 1), jnp.float32),
        grid_spec=pltpu.PrefetchScalarGridSpec(
            num_scalar_prefetch=0,
            grid=grid,
            in_specs=[
                pl.BlockSpec((block_n, C), lambda i: (i, 0)),
                pl.BlockSpec((block_n, 1), lambda i: (i, 0)),
            ],
            out_specs=pl.BlockSpec((block_n, 1), lambda i: (i, 0)),
        ),
        compiler_params=pltpu.CompilerParams(
            dimension_semantics=("parallel",),        # independent row tiles
            vmem_limit_bytes=48 * 1024 * 1024,        # matches the tile accounting; v7x-safe
        ),
    )(x, tgt2d)

    # Tiny final reduction outside the kernel (matches loss.sum()).
    return jnp.sum(per_row[:, 0])


def _reference(x, target, smoothing=0.1):
    confidence = 1.0 - smoothing
    logprobs = jax.nn.log_softmax(x.astype(jnp.float32), axis=-1)
    nll = -jnp.take_along_axis(logprobs, target[:, None], axis=-1)[:, 0]
    smooth = -jnp.mean(logprobs, axis=-1)
    return jnp.sum(confidence * nll + smoothing * smooth)


if __name__ == "__main__":
    key = jax.random.PRNGKey(0)
    k1, k2, k3, k4 = jax.random.split(key, 4)

    # Case 1: small f32 logits (batch=8, classes=32), single tile.
    N, C = 8, 32
    x = jax.random.normal(k1, (N, C), dtype=jnp.float32)
    target = jax.random.randint(k2, (N,), 0, C, dtype=jnp.int32)
    loss = jax.block_until_ready(label_smoothing_cross_entropy(x, target, smoothing=0.1))
    ref = _reference(x, target, smoothing=0.1)
    assert jnp.allclose(loss, ref, rtol=1e-5, atol=1e-5), (loss, ref)

    # Case 2: non-multiple-of-16 batch + multi-tile ragged grid + bf16 logits streamed as-is.
    N2, C2 = 100, 160
    x2 = (jax.random.normal(k3, (N2, C2), dtype=jnp.float32) * 2.0).astype(jnp.bfloat16)
    target2 = jax.random.randint(k4, (N2,), 0, C2, dtype=jnp.int32)
    loss2 = jax.block_until_ready(
        label_smoothing_cross_entropy(x2, target2, smoothing=0.1, block_n=16)
    )
    ref2 = _reference(x2, target2, smoothing=0.1)
    assert jnp.allclose(loss2, ref2, rtol=2e-2, atol=2e-2), (loss2, ref2)

    # Case 3: auto block_n with a ragged batch (exercises _pick_block_n + masked last block).
    N3, C3 = 100, 256
    x3 = jax.random.normal(k1, (N3, C3), dtype=jnp.float32)
    target3 = jax.random.randint(k2, (N3,), 0, C3, dtype=jnp.int32)
    loss3 = jax.block_until_ready(label_smoothing_cross_entropy(x3, target3, smoothing=0.1))
    ref3 = _reference(x3, target3, smoothing=0.1)
    assert jnp.allclose(loss3, ref3, rtol=1e-5, atol=1e-4), (loss3, ref3)

    print("KERNEL_OK")
</pallas_src>

<mosaic_0001>
module attributes {stable_mosaic.version = 11 : i64} {
  func.func @_ls_ce_kernel(%arg0: i32, %arg1: memref<8x32xf32, #tpu.memory_space<vmem>>, %arg2: memref<8x1xi32, #tpu.memory_space<vmem>>, %arg3: memref<8x1xf32, #tpu.memory_space<vmem>>) attributes {dimension_semantics = [#tpu.dimension_semantics<parallel>], iteration_bounds = array<i64: 1>, scalar_prefetch = 0 : i64, scratch_operands = 0 : i64, tpu.core_type = #tpu.core_type<tc>, window_params = [{transform_indices = @transform_0, window_bounds = array<i64: 8, 32>}, {transform_indices = @transform_1, window_bounds = array<i64: 8, 1>}, {transform_indices = @transform_2, window_bounds = array<i64: 8, 1>}]} {
    %c0 = arith.constant 0 : index
    %c0_0 = arith.constant 0 : index
    %0 = vector.load %arg1[%c0, %c0_0] : memref<8x32xf32, #tpu.memory_space<vmem>>, vector<8x32xf32>
    %c0_1 = arith.constant 0 : index
    %c0_2 = arith.constant 0 : index
    %1 = vector.load %arg2[%c0_1, %c0_2] : memref<8x1xi32, #tpu.memory_space<vmem>>, vector<8x1xi32>
    %cst = arith.constant dense<0xFF800000> : vector<8xf32>
    %2 = vector.multi_reduction <maximumf>, %0, %cst [1] : vector<8x32xf32> to vector<8xf32>
    %3 = vector.shape_cast %2 : vector<8xf32> to vector<8x1xf32>
    %cst_3 = arith.constant 1.000000e+00 : f32
    %4 = vector.broadcast %cst_3 : f32 to vector<32x1xf32>
    %5 = vector.broadcast %3 : vector<8x1xf32> to vector<8x32xf32>
    %6 = arith.subf %0, %5 : vector<8x32xf32>
    %7 = math.exp %6 : vector<8x32xf32>
    %cst_4 = arith.constant dense<0.000000e+00> : vector<8x1xf32>
    %8 = tpu.matmul %7, %4, %cst_4 {dimension_numbers = #tpu.dot_dimension_numbers<[1], [0], [0], [1], [0, 0, 1, 1], [], []>} : vector<8x32xf32>, vector<32x1xf32>, vector<8x1xf32> -> vector<8x1xf32>
    %9 = math.log %8 : vector<8x1xf32>
    %10 = tpu.iota {dimensions = array<i32: 1>} : vector<8x32xi32>
    %11 = vector.broadcast %1 : vector<8x1xi32> to vector<8x32xi32>
    %12 = arith.cmpi eq, %10, %11 : vector<8x32xi32>
    %cst_5 = arith.constant 0.903124988 : f32
    %cst_6 = arith.constant 3.125000e-03 : f32
    %13 = vector.broadcast %cst_5 : f32 to vector<8x32xf32>
    %14 = vector.broadcast %cst_6 : f32 to vector<8x32xf32>
    %15 = arith.select %12, %13, %14 : vector<8x32xi1>, vector<8x32xf32>
    %16 = arith.mulf %0, %15 : vector<8x32xf32>
    %cst_7 = arith.constant dense<0.000000e+00> : vector<8x1xf32>
    %17 = tpu.matmul %16, %4, %cst_7 {dimension_numbers = #tpu.dot_dimension_numbers<[1], [0], [0], [1], [0, 0, 1, 1], [], []>} : vector<8x32xf32>, vector<32x1xf32>, vector<8x1xf32> -> vector<8x1xf32>
    %18 = arith.addf %3, %9 : vector<8x1xf32>
    %19 = arith.subf %18, %17 : vector<8x1xf32>
    %c0_8 = arith.constant 0 : index
    %c0_9 = arith.constant 0 : index
    %20 = vector.load %arg3[%c0_8, %c0_9] : memref<8x1xf32, #tpu.memory_space<vmem>>, vector<8x1xf32>
    tpu.vector_store %arg3[%c0_8, %c0_9], %19 {strides = array<i32>} : memref<8x1xf32, #tpu.memory_space<vmem>>, vector<8x1xf32>,
    return
  }
  func.func @transform_0(%arg0: i32) -> (i32, i32) {
    %c0_i32 = arith.constant 0 : i32
    %c0_i32_0 = arith.constant 0 : i32
    return %arg0, %c0_i32 : i32, i32
  }
  func.func @transform_1(%arg0: i32) -> (i32, i32) {
    %c0_i32 = arith.constant 0 : i32
    %c0_i32_0 = arith.constant 0 : i32
    return %arg0, %c0_i32 : i32, i32
  }
  func.func @transform_2(%arg0: i32) -> (i32, i32) {
    %c0_i32 = arith.constant 0 : i32
    %c0_i32_0 = arith.constant 0 : i32
    return %arg0, %c0_i32 : i32, i32
  }
}

</mosaic_0001>

<bundles_post_ra>
// kernel: tpu_custom_call.1
= control target key start
LH: loop header
LB: loop body
LE: loop exit
PB: predicated region body
PF: predicated region fallthrough
CT: control target
= control target key end

     0   :  { %vm13_vm0 = vcmask 261120   ;;  %v94_v1 = vmov 0   ;;  %v95_v4 = vmov 1.0   ;;  %v45_v9 = vlaneseq  ;;  %s124_s0 = inlined_call_operand.vmem [shape: f32[8,32], index: 0, kind: input, shape index: {}]   ;;  %s125_s1 = inlined_call_operand.vmem [shape: s32[8,1], index: 1, kind: input, shape index: {}]   ;;  %s126_s2 = inlined_call_operand.vmem [shape: f32[8,1], index: 2, kind: output, shape index: {}]  }
   0x1   :  { %v11_v0 = vld [vmem:[%s124_s0] sm:$0xff]  ;;  %89 = vset.pattern.permute.xlu0 %v94_v1  ;;  %35 = vmatpush.msra.mxu0 %v95_v4  ;;  %v96_v12 = vmov 0.003125   ;;  %vm78_vm2 = vcmask 7168  }
   0x2   :  { %v14_v2 = vsel %vm13_vm0, %v11_v0, -inf  ;;  %v12_v3 = vld [vmem:[%s125_s1] sm:$0xff]  ;;  %68 = vmatpush.msra.mxu1 %v95_v4  ;;  %v46_v10 = vand.u32 127, %v45_v9 }
   0x3   :  { %15 = vmax.xlane.f32.xlu0 %v14_v2  ;;  %36 = vmatpush.msra.mxu0 %v95_v4 }
   0x4   :  { %69 = vmatpush.msra.mxu1 %v95_v4 }
   0x5   :  { %37 = vmatpush.msra.mxu0 %v95_v4 }
   0x6   :  { %70 = vmatpush.msra.mxu1 %v95_v4 }
   0x7   :  { %38 = vmatpush.msra.mxu0 %v95_v4 }
   0x8   :  { %71 = vmatpush.msra.mxu1 %v95_v4 }
  0x17   :  { %48 = vperm.xlu0 %89, %v12_v3  }
  0x76   :  { %v16_v5 = vpop.xlane.xlu0 %15 }
  0x77   :  { %v17_v6 = vsub.f32 %v11_v0, %v16_v5 }
  0x79   :  { %v18_v7 = vmul.f32 1.442695, %v17_v6 }
  0x7b   :  { %90 = vpow2.f32 %v18_v7 }
  0x81   :  { %v91_v8 = vpop.eup %90 }
  0x82   :  { %84 = vmatmul.msk.f32.vlgmr.msra.gmra.mxu0 %vm13_vm0, %v91_v8 }
  0x89   :  { %v49_v11 = vpop.permute.xlu0 %48 }
  0x8a   :  { %vm50_vm1 = vcmp.eq.s32.totalorder %v46_v10, %v49_v11 }
  0x8b   :  { %v51_v13 = vsel %vm50_vm1, 0.903125, %v96_v12 }
  0x8c   :  { %v52_v14 = vmul.f32 %v51_v13, %v11_v0 }
  0x8e   :  { %85 = vmatmul.msk.f32.vlgmr.msra.gmra.mxu1 %vm13_vm0, %v52_v14 }
  0xff   :  { %v40_v15 = vpop.f32.mrf.mxu0 }
 0x100   :  { %92 = vlog2.f32 %v40_v15 }
 0x106   :  { %v93_v16 = vpop.eup %92 }
 0x107   :  { %v44_v17 = vmul.f32 0.6931472, %v93_v16 }
 0x109   :  { %v76_v18 = vadd.f32 %v44_v17, %v16_v5 }
 0x10b   :  { %v73_v19 = vpop.f32.mrf.mxu1 }
 0x10c   :  { %v77_v20 = vsub.f32 %v76_v18, %v73_v19 }
 0x10e   :  { %79 = vst.msk [vmem:[%s126_s2] sm:$0xff] %vm78_vm2, %v77_v20 }

</bundles_post_ra>
